<compile_context>
chip_gen: v7x
topology: tpu7x:2x2x1
jax: 0.10.0
libtpu: 0.0.40
codegen_flags: <defaults>
</compile_context>

<pallas_src>
import jax
import jax.numpy as jnp
from jax.experimental import pallas as pl
from jax.experimental.pallas import tpu as pltpu


def _round_up(n, m):
    return ((n + m - 1) // m) * m


def mlp_kernel(x_ref, p_ref, o_ref):
    # Packed parameters: resident in VMEM across all grid steps (constant
    # index_map), loaded via small static-window reads.
    w1 = p_ref[0:6, 0:8]      # (6, 8)
    b1 = p_ref[0:6, 8:9]      # (6, 1)
    w2 = p_ref[0:4, 16:22]    # (4, 6)
    b2 = p_ref[0:4, 22:23]    # (4, 1)
    w3 = p_ref[0:1, 24:28]    # (1, 4)
    b3 = p_ref[0:1, 28:29]    # (1, 1)

    x = x_ref[...]            # (8, bb): batch on the lane axis

    def layer(h, w, b):
        """sigmoid(w @ h + b) with an unrolled VPU MAC chain (batch on lanes)."""
        n_out, n_in = w.shape
        bb = h.shape[1]
        acc = jnp.broadcast_to(b, (n_out, bb))          # bias over lanes
        for k in range(n_in):                           # n_in in {8,6,4}: unrolled
            acc = acc + w[:, k:k + 1] * h[k:k + 1, :]   # (n_out,1)*(1,bb) outer product
        # sigmoid = 1 / (1 + exp(-acc)); exp + approx reciprocal both on EUP.
        return pl.reciprocal(1.0 + jnp.exp(-acc), approx=True)

    h = layer(x, w1, b1)
    h = layer(h, w2, b2)
    h = layer(h, w3, b3)
    o_ref[...] = h.astype(o_ref.dtype)                  # lane-dense (1, bb) store


def pack_params(w1, b1, w2, b2, w3, b3):
    """Pack all weights/biases into one (8, 128) f32 constant (one VMEM tile)."""
    p = jnp.zeros((8, 128), jnp.float32)
    p = p.at[0:6, 0:8].set(w1.astype(jnp.float32))
    p = p.at[0:6, 8].set(b1.astype(jnp.float32))
    p = p.at[0:4, 16:22].set(w2.astype(jnp.float32))
    p = p.at[0:4, 22].set(b2.astype(jnp.float32))
    p = p.at[0:1, 24:28].set(w3.astype(jnp.float32))
    p = p.at[0:1, 28].set(b3.astype(jnp.float32))
    return p


def mlp_forward(x, packed_params, block_b=32768):
    """x: (B, 8) -> (B, 1)."""
    B, F = x.shape
    assert F == 8

    # Feature-major staging: one fused XLA transpose (B,8)->(8,B).  Chosen over
    # an in-kernel (bb,8)->(8,bb) relayout for lowering robustness across
    # v5e/v6e/v7x; it costs one extra pass over the 32 B/sample input stream.
    xt = x.astype(jnp.float32).T                         # (8, B)

    # Batch tile: as large as block_b, 128-lane aligned, but never fewer than
    # two blocks when B > 128 so v7x's two TensorCores both get work.
    bb = max(128, min(block_b, _round_up(pl.cdiv(B, 2), 128)))
    n_blocks = pl.cdiv(B, bb)                            # ragged last block is masked

    out_t = pl.pallas_call(
        mlp_kernel,
        out_shape=jax.ShapeDtypeStruct((1, B), jnp.float32),
        grid_spec=pltpu.PrefetchScalarGridSpec(
            num_scalar_prefetch=0,
            grid=(n_blocks,),
            in_specs=[
                pl.BlockSpec((8, bb), lambda i: (0, i)),     # activations, tiled over batch
                pl.BlockSpec((8, 128), lambda i: (0, 0)),    # packed params, stay resident
            ],
            out_specs=pl.BlockSpec((1, bb), lambda i: (0, i)),
        ),
        compiler_params=pltpu.CompilerParams(
            dimension_semantics=("parallel",),               # shard batch tiles across TCs (v7x)
            vmem_limit_bytes=32 * 1024 * 1024,               # headroom for 1 MiB tiles on v5e
        ),
    )(xt, packed_params)

    return out_t.T                                           # (B, 1)


def init_params(key):
    """PyTorch nn.Linear default init: U(-1/sqrt(fan_in), 1/sqrt(fan_in))."""
    def linear(key, fan_in, fan_out):
        kw, kb = jax.random.split(key)
        bound = float(fan_in) ** -0.5
        w = jax.random.uniform(kw, (fan_out, fan_in), jnp.float32, -bound, bound)
        b = jax.random.uniform(kb, (fan_out,), jnp.float32, -bound, bound)
        return w, b

    k1, k2, k3 = jax.random.split(key, 3)
    w1, b1 = linear(k1, 8, 6)
    w2, b2 = linear(k2, 6, 4)
    w3, b3 = linear(k3, 4, 1)
    return (w1, b1, w2, b2, w3, b3)


if __name__ == "__main__":
    key = jax.random.PRNGKey(0)
    k_params, k_x = jax.random.split(key)

    params = init_params(k_params)
    packed = pack_params(*params)

    B = 200                                   # small; exercises 2 blocks + ragged edge (200 = 128+72)
    x = jax.random.normal(k_x, (B, 8), jnp.float32)

    fwd = jax.jit(lambda xx: mlp_forward(xx, packed))
    out = jax.block_until_ready(fwd(x))

    # Plain-JAX reference (same PyTorch math: y = sigmoid(x @ W^T + b)).
    w1, b1, w2, b2, w3, b3 = params
    ref = jax.nn.sigmoid(x @ w1.T + b1)
    ref = jax.nn.sigmoid(ref @ w2.T + b2)
    ref = jax.nn.sigmoid(ref @ w3.T + b3)     # (B, 1)

    assert out.shape == (B, 1), out.shape
    err = float(jnp.max(jnp.abs(out - ref)))
    # Tolerance loosened vs 1e-5 because of pl.reciprocal(approx=True); any
    # layout/weight bug would produce errors O(0.1) or larger.
    assert err < 1e-2, err

    print("KERNEL_OK")
</pallas_src>

<mosaic_0001>
module attributes {stable_mosaic.version = 11 : i64} {
  func.func @mlp_kernel(%arg0: i32, %arg1: memref<8x128xf32, #tpu.memory_space<vmem>>, %arg2: memref<8x128xf32, #tpu.memory_space<vmem>>, %arg3: memref<1x128xf32, #tpu.memory_space<vmem>>) attributes {dimension_semantics = [#tpu.dimension_semantics<parallel>], iteration_bounds = array<i64: 2>, scalar_prefetch = 0 : i64, scratch_operands = 0 : i64, tpu.core_type = #tpu.core_type<tc>, window_params = [{transform_indices = @transform_0, window_bounds = array<i64: 8, 128>}, {pipeline_mode = #tpu.pipeline_mode<synchronous>, transform_indices = @transform_1, window_bounds = array<i64: 8, 128>}, {transform_indices = @transform_2, window_bounds = array<i64: 1, 128>}]} {
    %c0 = arith.constant 0 : index
    %c0_0 = arith.constant 0 : index
    %0 = vector.load %arg2[%c0, %c0_0] : memref<8x128xf32, #tpu.memory_space<vmem>>, vector<6x8xf32>
    %c0_1 = arith.constant 0 : index
    %c8 = arith.constant 8 : index
    %1 = vector.load %arg2[%c0_1, %c8] : memref<8x128xf32, #tpu.memory_space<vmem>>, vector<6x1xf32>
    %c0_2 = arith.constant 0 : index
    %c16 = arith.constant 16 : index
    %2 = vector.load %arg2[%c0_2, %c16] : memref<8x128xf32, #tpu.memory_space<vmem>>, vector<4x6xf32>
    %c0_3 = arith.constant 0 : index
    %c22 = arith.constant 22 : index
    %3 = vector.load %arg2[%c0_3, %c22] : memref<8x128xf32, #tpu.memory_space<vmem>>, vector<4x1xf32>
    %c0_4 = arith.constant 0 : index
    %c24 = arith.constant 24 : index
    %4 = vector.load %arg2[%c0_4, %c24] : memref<8x128xf32, #tpu.memory_space<vmem>>, vector<1x4xf32>
    %c0_5 = arith.constant 0 : index
    %c28 = arith.constant 28 : index
    %5 = vector.load %arg2[%c0_5, %c28] : memref<8x128xf32, #tpu.memory_space<vmem>>, vector<1x1xf32>
    %c0_6 = arith.constant 0 : index
    %c0_7 = arith.constant 0 : index
    %6 = vector.load %arg1[%c0_6, %c0_7] : memref<8x128xf32, #tpu.memory_space<vmem>>, vector<8x128xf32>
    %7 = vector.shape_cast %1 : vector<6x1xf32> to vector<6x1xf32>
    %8 = vector.broadcast %7 : vector<6x1xf32> to vector<6x128xf32>
    %9 = vector.extract_strided_slice %0 {offsets = [0, 0], sizes = [6, 1], strides = [1, 1]} : vector<6x8xf32> to vector<6x1xf32>
    %10 = vector.extract_strided_slice %6 {offsets = [0, 0], sizes = [1, 128], strides = [1, 1]} : vector<8x128xf32> to vector<1x128xf32>
    %11 = vector.broadcast %9 : vector<6x1xf32> to vector<6x128xf32>
    %12 = vector.broadcast %10 : vector<1x128xf32> to vector<6x128xf32>
    %13 = arith.mulf %11, %12 : vector<6x128xf32>
    %14 = arith.addf %8, %13 : vector<6x128xf32>
    %15 = vector.extract_strided_slice %0 {offsets = [0, 1], sizes = [6, 1], strides = [1, 1]} : vector<6x8xf32> to vector<6x1xf32>
    %16 = vector.extract_strided_slice %6 {offsets = [1, 0], sizes = [1, 128], strides = [1, 1]} : vector<8x128xf32> to vector<1x128xf32>
    %17 = vector.broadcast %15 : vector<6x1xf32> to vector<6x128xf32>
    %18 = vector.broadcast %16 : vector<1x128xf32> to vector<6x128xf32>
    %19 = arith.mulf %17, %18 : vector<6x128xf32>
    %20 = arith.addf %14, %19 : vector<6x128xf32>
    %21 = vector.extract_strided_slice %0 {offsets = [0, 2], sizes = [6, 1], strides = [1, 1]} : vector<6x8xf32> to vector<6x1xf32>
    %22 = vector.extract_strided_slice %6 {offsets = [2, 0], sizes = [1, 128], strides = [1, 1]} : vector<8x128xf32> to vector<1x128xf32>
    %23 = vector.broadcast %21 : vector<6x1xf32> to vector<6x128xf32>
    %24 = vector.broadcast %22 : vector<1x128xf32> to vector<6x128xf32>
    %25 = arith.mulf %23, %24 : vector<6x128xf32>
    %26 = arith.addf %20, %25 : vector<6x128xf32>
    %27 = vector.extract_strided_slice %0 {offsets = [0, 3], sizes = [6, 1], strides = [1, 1]} : vector<6x8xf32> to vector<6x1xf32>
    %28 = vector.extract_strided_slice %6 {offsets = [3, 0], sizes = [1, 128], strides = [1, 1]} : vector<8x128xf32> to vector<1x128xf32>
    %29 = vector.broadcast %27 : vector<6x1xf32> to vector<6x128xf32>
    %30 = vector.broadcast %28 : vector<1x128xf32> to vector<6x128xf32>
    %31 = arith.mulf %29, %30 : vector<6x128xf32>
    %32 = arith.addf %26, %31 : vector<6x128xf32>
    %33 = vector.extract_strided_slice %0 {offsets = [0, 4], sizes = [6, 1], strides = [1, 1]} : vector<6x8xf32> to vector<6x1xf32>
    %34 = vector.extract_strided_slice %6 {offsets = [4, 0], sizes = [1, 128], strides = [1, 1]} : vector<8x128xf32> to vector<1x128xf32>
    %35 = vector.broadcast %33 : vector<6x1xf32> to vector<6x128xf32>
    %36 = vector.broadcast %34 : vector<1x128xf32> to vector<6x128xf32>
    %37 = arith.mulf %35, %36 : vector<6x128xf32>
    %38 = arith.addf %32, %37 : vector<6x128xf32>
    %39 = vector.extract_strided_slice %0 {offsets = [0, 5], sizes = [6, 1], strides = [1, 1]} : vector<6x8xf32> to vector<6x1xf32>
    %40 = vector.extract_strided_slice %6 {offsets = [5, 0], sizes = [1, 128], strides = [1, 1]} : vector<8x128xf32> to vector<1x128xf32>
    %41 = vector.broadcast %39 : vector<6x1xf32> to vector<6x128xf32>
    %42 = vector.broadcast %40 : vector<1x128xf32> to vector<6x128xf32>
    %43 = arith.mulf %41, %42 : vector<6x128xf32>
    %44 = arith.addf %38, %43 : vector<6x128xf32>
    %45 = vector.extract_strided_slice %0 {offsets = [0, 6], sizes = [6, 1], strides = [1, 1]} : vector<6x8xf32> to vector<6x1xf32>
    %46 = vector.extract_strided_slice %6 {offsets = [6, 0], sizes = [1, 128], strides = [1, 1]} : vector<8x128xf32> to vector<1x128xf32>
    %47 = vector.broadcast %45 : vector<6x1xf32> to vector<6x128xf32>
    %48 = vector.broadcast %46 : vector<1x128xf32> to vector<6x128xf32>
    %49 = arith.mulf %47, %48 : vector<6x128xf32>
    %50 = arith.addf %44, %49 : vector<6x128xf32>
    %51 = vector.extract_strided_slice %0 {offsets = [0, 7], sizes = [6, 1], strides = [1, 1]} : vector<6x8xf32> to vector<6x1xf32>
    %52 = vector.extract_strided_slice %6 {offsets = [7, 0], sizes = [1, 128], strides = [1, 1]} : vector<8x128xf32> to vector<1x128xf32>
    %53 = vector.broadcast %51 : vector<6x1xf32> to vector<6x128xf32>
    %54 = vector.broadcast %52 : vector<1x128xf32> to vector<6x128xf32>
    %55 = arith.mulf %53, %54 : vector<6x128xf32>
    %56 = arith.addf %50, %55 : vector<6x128xf32>
    %cst = arith.constant 0.000000e+00 : f32
    %57 = vector.broadcast %cst : f32 to vector<6x128xf32>
    %58 = arith.subf %57, %56 : vector<6x128xf32>
    %59 = math.exp %58 : vector<6x128xf32>
    %cst_8 = arith.constant 1.000000e+00 : f32
    %60 = vector.broadcast %cst_8 : f32 to vector<6x128xf32>
    %61 = arith.addf %60, %59 : vector<6x128xf32>
    %62 = tpu.reciprocal %61 {approx = true} : vector<6x128xf32> -> vector<6x128xf32>
    %63 = vector.shape_cast %3 : vector<4x1xf32> to vector<4x1xf32>
    %64 = vector.broadcast %63 : vector<4x1xf32> to vector<4x128xf32>
    %65 = vector.extract_strided_slice %2 {offsets = [0, 0], sizes = [4, 1], strides = [1, 1]} : vector<4x6xf32> to vector<4x1xf32>
    %66 = vector.extract_strided_slice %62 {offsets = [0, 0], sizes = [1, 128], strides = [1, 1]} : vector<6x128xf32> to vector<1x128xf32>
    %67 = vector.broadcast %65 : vector<4x1xf32> to vector<4x128xf32>
    %68 = vector.broadcast %66 : vector<1x128xf32> to vector<4x128xf32>
    %69 = arith.mulf %67, %68 : vector<4x128xf32>
    %70 = arith.addf %64, %69 : vector<4x128xf32>
    %71 = vector.extract_strided_slice %2 {offsets = [0, 1], sizes = [4, 1], strides = [1, 1]} : vector<4x6xf32> to vector<4x1xf32>
    %72 = vector.extract_strided_slice %62 {offsets = [1, 0], sizes = [1, 128], strides = [1, 1]} : vector<6x128xf32> to vector<1x128xf32>
    %73 = vector.broadcast %71 : vector<4x1xf32> to vector<4x128xf32>
    %74 = vector.broadcast %72 : vector<1x128xf32> to vector<4x128xf32>
    %75 = arith.mulf %73, %74 : vector<4x128xf32>
    %76 = arith.addf %70, %75 : vector<4x128xf32>
    %77 = vector.extract_strided_slice %2 {offsets = [0, 2], sizes = [4, 1], strides = [1, 1]} : vector<4x6xf32> to vector<4x1xf32>
    %78 = vector.extract_strided_slice %62 {offsets = [2, 0], sizes = [1, 128], strides = [1, 1]} : vector<6x128xf32> to vector<1x128xf32>
    %79 = vector.broadcast %77 : vector<4x1xf32> to vector<4x128xf32>
    %80 = vector.broadcast %78 : vector<1x128xf32> to vector<4x128xf32>
    %81 = arith.mulf %79, %80 : vector<4x128xf32>
    %82 = arith.addf %76, %81 : vector<4x128xf32>
    %83 = vector.extract_strided_slice %2 {offsets = [0, 3], sizes = [4, 1], strides = [1, 1]} : vector<4x6xf32> to vector<4x1xf32>
    %84 = vector.extract_strided_slice %62 {offsets = [3, 0], sizes = [1, 128], strides = [1, 1]} : vector<6x128xf32> to vector<1x128xf32>
    %85 = vector.broadcast %83 : vector<4x1xf32> to vector<4x128xf32>
    %86 = vector.broadcast %84 : vector<1x128xf32> to vector<4x128xf32>
    %87 = arith.mulf %85, %86 : vector<4x128xf32>
    %88 = arith.addf %82, %87 : vector<4x128xf32>
    %89 = vector.extract_strided_slice %2 {offsets = [0, 4], sizes = [4, 1], strides = [1, 1]} : vector<4x6xf32> to vector<4x1xf32>
    %90 = vector.extract_strided_slice %62 {offsets = [4, 0], sizes = [1, 128], strides = [1, 1]} : vector<6x128xf32> to vector<1x128xf32>
    %91 = vector.broadcast %89 : vector<4x1xf32> to vector<4x128xf32>
    %92 = vector.broadcast %90 : vector<1x128xf32> to vector<4x128xf32>
    %93 = arith.mulf %91, %92 : vector<4x128xf32>
    %94 = arith.addf %88, %93 : vector<4x128xf32>
    %95 = vector.extract_strided_slice %2 {offsets = [0, 5], sizes = [4, 1], strides = [1, 1]} : vector<4x6xf32> to vector<4x1xf32>
    %96 = vector.extract_strided_slice %62 {offsets = [5, 0], sizes = [1, 128], strides = [1, 1]} : vector<6x128xf32> to vector<1x128xf32>
    %97 = vector.broadcast %95 : vector<4x1xf32> to vector<4x128xf32>
    %98 = vector.broadcast %96 : vector<1x128xf32> to vector<4x128xf32>
    %99 = arith.mulf %97, %98 : vector<4x128xf32>
    %100 = arith.addf %94, %99 : vector<4x128xf32>
    %cst_9 = arith.constant 0.000000e+00 : f32
    %101 = vector.broadcast %cst_9 : f32 to vector<4x128xf32>
    %102 = arith.subf %101, %100 : vector<4x128xf32>
    %103 = math.exp %102 : vector<4x128xf32>
    %cst_10 = arith.constant 1.000000e+00 : f32
    %104 = vector.broadcast %cst_10 : f32 to vector<4x128xf32>
    %105 = arith.addf %104, %103 : vector<4x128xf32>
    %106 = tpu.reciprocal %105 {approx = true} : vector<4x128xf32> -> vector<4x128xf32>
    %107 = vector.shape_cast %5 : vector<1x1xf32> to vector<1x1xf32>
    %108 = vector.broadcast %107 : vector<1x1xf32> to vector<1x128xf32>
    %109 = vector.extract_strided_slice %4 {offsets = [0, 0], sizes = [1, 1], strides = [1, 1]} : vector<1x4xf32> to vector<1x1xf32>
    %110 = vector.extract_strided_slice %106 {offsets = [0, 0], sizes = [1, 128], strides = [1, 1]} : vector<4x128xf32> to vector<1x128xf32>
    %111 = vector.broadcast %109 : vector<1x1xf32> to vector<1x128xf32>
    %112 = arith.mulf %111, %110 : vector<1x128xf32>
    %113 = arith.addf %108, %112 : vector<1x128xf32>
    %114 = vector.extract_strided_slice %4 {offsets = [0, 1], sizes = [1, 1], strides = [1, 1]} : vector<1x4xf32> to vector<1x1xf32>
    %115 = vector.extract_strided_slice %106 {offsets = [1, 0], sizes = [1, 128], strides = [1, 1]} : vector<4x128xf32> to vector<1x128xf32>
    %116 = vector.broadcast %114 : vector<1x1xf32> to vector<1x128xf32>
    %117 = arith.mulf %116, %115 : vector<1x128xf32>
    %118 = arith.addf %113, %117 : vector<1x128xf32>
    %119 = vector.extract_strided_slice %4 {offsets = [0, 2], sizes = [1, 1], strides = [1, 1]} : vector<1x4xf32> to vector<1x1xf32>
    %120 = vector.extract_strided_slice %106 {offsets = [2, 0], sizes = [1, 128], strides = [1, 1]} : vector<4x128xf32> to vector<1x128xf32>
    %121 = vector.broadcast %119 : vector<1x1xf32> to vector<1x128xf32>
    %122 = arith.mulf %121, %120 : vector<1x128xf32>
    %123 = arith.addf %118, %122 : vector<1x128xf32>
    %124 = vector.extract_strided_slice %4 {offsets = [0, 3], sizes = [1, 1], strides = [1, 1]} : vector<1x4xf32> to vector<1x1xf32>
    %125 = vector.extract_strided_slice %106 {offsets = [3, 0], sizes = [1, 128], strides = [1, 1]} : vector<4x128xf32> to vector<1x128xf32>
    %126 = vector.broadcast %124 : vector<1x1xf32> to vector<1x128xf32>
    %127 = arith.mulf %126, %125 : vector<1x128xf32>
    %128 = arith.addf %123, %127 : vector<1x128xf32>
    %cst_11 = arith.constant 0.000000e+00 : f32
    %129 = vector.broadcast %cst_11 : f32 to vector<1x128xf32>
    %130 = arith.subf %129, %128 : vector<1x128xf32>
    %131 = math.exp %130 : vector<1x128xf32>
    %cst_12 = arith.constant 1.000000e+00 : f32
    %132 = vector.broadcast %cst_12 : f32 to vector<1x128xf32>
    %133 = arith.addf %132, %131 : vector<1x128xf32>
    %134 = tpu.reciprocal %133 {approx = true} : vector<1x128xf32> -> vector<1x128xf32>
    %c0_13 = arith.constant 0 : index
    %c0_14 = arith.constant 0 : index
    %135 = vector.load %arg3[%c0_13, %c0_14] : memref<1x128xf32, #tpu.memory_space<vmem>>, vector<1x128xf32>
    tpu.vector_store %arg3[%c0_13, %c0_14], %134 {strides = array<i32>} : memref<1x128xf32, #tpu.memory_space<vmem>>, vector<1x128xf32>,
    return
  }
  func.func @transform_0(%arg0: i32) -> (i32, i32) {
    %c0_i32 = arith.constant 0 : i32
    %c0_i32_0 = arith.constant 0 : i32
    return %c0_i32, %arg0 : i32, i32
  }
  func.func @transform_1(%arg0: i32) -> (i32, i32) {
    %c0_i32 = arith.constant 0 : i32
    %c0_i32_0 = arith.constant 0 : i32
    %c0_i32_1 = arith.constant 0 : i32
    return %c0_i32, %c0_i32_0 : i32, i32
  }
  func.func @transform_2(%arg0: i32) -> (i32, i32) {
    %c0_i32 = arith.constant 0 : i32
    %c0_i32_0 = arith.constant 0 : i32
    return %c0_i32, %arg0 : i32, i32
  }
}

</mosaic_0001>

<bundles_post_ra>
// kernel: _lambda_.1
= control target key start
LH: loop header
LB: loop body
LE: loop exit
PB: predicated region body
PF: predicated region fallthrough
CT: control target
= control target key end

     0   :  { %7 = vsyncpa [#allocation3], 0  ;;  %s973_s0 = inlined_call_operand.hbm [shape: f32[8,200], index: 0, kind: input, shape index: {}]   ;;  %s974_s1 = inlined_call_operand.hbm [shape: f32[8,128], index: 1, kind: input, shape index: {}]   ;;  %s975_s2 = inlined_call_operand.hbm [shape: f32[1,200], index: 2, kind: output, shape index: {}]  }
   0x1   :  { %9 = vsyncpa [#allocation3 + $0x1], 0 }
   0x2   :  { %10 = vsyncpa [#allocation6], 0 }
   0x3   :  { %11 = vsyncpa [#allocation4], 0 }
   0x4   :  { %13 = vsyncpa [#allocation4 + $0x1], 0  ;;  %s758_s9 = smov 0   ;;  %s760_s10 = smov 0  }
   0x5   :  { %s762_s11 = smov 0   ;;  %s764_s12 = smov 0  }
   0x6 LB: > { %s779_s13 = sadd.s32 4294967295, %s717_s12   ;;  %s466_s14 = sadd.s32 4294967294, %s717_s12   ;;  %s717_s12 = sphi %s764_s12, %s999_s12   ;;  %s713_s11 = sphi %s762_s11, %s998_s11   ;;  %s709_s10 = sphi %s760_s10, %s997_s10   ;;  %s705_s9 = sphi %s758_s9, %s996_s9  }
   0x7   : > { %p39_p0 = scmp.ne.s32.totalorder %s709_s10, %s705_s9  ;;  %p976_p1 = scmp.eq.s32.totalorder %s779_s13, 0 }
   0x8   : > { %p90_p3 = scmp.eq.s32.totalorder %s466_s14, 1  ;;  %p467_p5 = scmp.ge.s32.totalorder %s717_s12, 1 }
   0x9   : > { %p788_p4 = por %p976_p1, %p39_p0  ;;  %p97_p7 = scmp.lt.s32.totalorder %s717_s12, 3 }
   0xa   : > { %p793_p6 = por %p90_p3, %p39_p0  ;;  %s719_s18 = smov [#allocation5]  }
   0xb   : > { %s979_s15 = scalar_select %p788_p4, 1, 0 }
   0xc   : > { %s980_s16 = scalar_select %p793_p6, 1, 0 }
   0xd   : > { %p798_p8 = pnand %p467_p5, %p97_p7  ;;  %s110_s19 = sshll.u32 %s719_s18, 4  ;;  %s111_s19 = int_to_ptr.vmem [resolvable:$true] %s110_s19 }
   0xe   : > { %s806_s20 = sadd.s32 1, %s717_s12   ;;  %s26_s24 = sadd.s32 1, %s713_s11 }
   0xf   : > { %s981_s17 = scalar_select %p798_p8, 1, 0 }
  0x10   : > { %p486_p10 = pneg %p798_p8  ;;  %s23_s22 = ssub.s32 %s717_s12, %s806_s20 }
  0x11   : > { %p816_p12 = scmp.eq.s32.totalorder %s23_s22, 0  ;;  %s589_s27 = scalar_lea.hbm %s974_s1, 128 }
  0x12   : > { %p810_p11 = pnand %p486_p10, %p976_p1  ;;  %p590_p0 = scmp.ne.s32.totalorder %s974_s1, %s589_s27 }
  0x13   : > { %s983_s23 = scalar_select %p816_p12, 1, 0 }
  0x14   : > { %p591_p3 = pneg %p810_p11  ;;  %p596_p10 = scmp.lt.u32.totalorder %s589_s27, %s974_s1 }
  0x16   : > { %p592_p5 = pnand %p591_p3, %p590_p0 }
  0x18   : > { %p593_p7 = pneg %p592_p5 }
  0x1a   : > { %p598_p9 = pnand %p596_p10, %p593_p7 }
  0x1c   : > { %601 = shalt.err (!%p598_p9)
}
  0x1d   : > { %s602_s4 = scalar_lea.vmem %s111_s19, 128  ;;  %p610_p6 = scmp.lt.s32.totalorder %s111_s19, %s111_s19 }
  0x1e   : > { %p603_p1 = scmp.ne.s32.totalorder %s111_s19, %s602_s4  ;;  %p611_p4 = scmp.lt.s32.totalorder %s602_s4, %s602_s4 }
  0x20   : > { %p605_p2 = pnand %p603_p1, %p591_p3  ;;  %p612_p8 = por %p611_p4, %p610_p6 }
  0x22   : > { %p606_p13 = pneg %p605_p2 }
  0x24   : > { %p613_p12 = pnand %p612_p8, %p606_p13 }
  0x26   : > { %616 = shalt.err (!%p613_p12)
}
  0x27   : > { %489 = dma.hbm_to_vmem [thread:$0]  (!%p810_p11), %s974_s1, 128, %s111_s19, [#allocation6]  }
  0x28   : > { %p984_p1 = scmp.ne.s32.totalorder %s983_s23, 0  ;;  %p34_p2 = scmp.eq.s32.totalorder %s717_s12, 0 }
  0x29   : > { %p985_p4 = scmp.ne.s32.totalorder %s713_s11, %s709_s10  ;;  %p986_p6 = scmp.eq.s32.totalorder %s779_s13, 1 }
  0x2a   : > { %s842_s7 = scalar_select %p984_p1, %s713_s11, %s26_s24  }
  0x2b   : > { %p850_p8 = por %p986_p6, %p985_p4  ;;  %p499_p9 = scmp.lt.s32.totalorder %s717_s12, 2 }
  0x2c   : > { %s121_s14 = sand.u32 1, %s713_s11   ;;  %p988_p12 = pmov %p985_p4 }
  0x2d   : > { %s470_s18 = sshll.u32 %s121_s14, 3  ;;  %s471_s21 = sshll.u32 %s717_s12, 7 }
  0x2e   : > { %p35_p13 = por %p34_p2, %p988_p12  ;;  %s863_s19 = scalar_lea.hbm %s973_s0, %s471_s21 }
  0x2f   : > { %s125_s23 = scalar_lea.vmem [#allocation2], %s470_s18  ;;  %s122_s27 = scalar_lea.sflag [#allocation3], %s121_s14 }
  0x30   : > { %s132_s24 = sshll.u32 %s125_s23, 4  ;;  %p865_p11 = pnand %p499_p9, %p35_p13  ;;  %s869_s24 = int_to_ptr.vmem [resolvable:$true] %s132_s24 }
  0x31   : > { %s617_s28 = scalar_lea.hbm %s863_s19, 128  ;;  %s622_s3 = scalar_lea.hbm %s973_s0, 256 }
  0x32   : > { %p618_p0 = scmp.ne.s32.totalorder %s863_s19, %s617_s28  ;;  %p619_p3 = pneg %p865_p11 }
  0x33   : > { %p623_p10 = scmp.lt.u32.totalorder %s863_s19, %s973_s0  ;;  %p624_p1 = scmp.lt.u32.totalorder %s622_s3, %s617_s28 }
  0x34   : > { %p620_p5 = pnand %p619_p3, %p618_p0  ;;  %p626_p4 = scmp.lt.u32.totalorder %s617_s28, %s863_s19 }
  0x35   : > { %p625_p2 = por %p624_p1, %p623_p10 }
  0x36   : > { %p621_p7 = pneg %p620_p5 }
  0x37   : > { %p627_p6 = por %p626_p4, %p625_p2 }
  0x39   : > { %p628_p9 = pnand %p627_p6, %p621_p7 }
  0x3b   : > { %631 = shalt.err (!%p628_p9)
}
  0x3c   : > { %s632_s6 = scalar_lea.vmem %s869_s24, 128  ;;  %s720_s14 = smov [#allocation2]  }
  0x3d   : > { %p633_p12 = scmp.ne.s32.totalorder %s869_s24, %s632_s6  ;;  %s637_s18 = sshll.u32 %s720_s14, 4  ;;  %s638_s18 = int_to_ptr.vmem [resolvable:$false] %s637_s18 }
  0x3e   : > { %s639_s21 = scalar_lea.vmem %s638_s18, 256  ;;  %p640_p5 = scmp.lt.s32.totalorder %s869_s24, %s638_s18 }
  0x3f   : > { %p635_p13 = pnand %p633_p12, %p619_p3  ;;  %p641_p10 = scmp.lt.s32.totalorder %s639_s21, %s632_s6 }
  0x41   : > { %p636_p0 = pneg %p635_p13  ;;  %p642_p1 = por %p641_p10, %p640_p5 }
  0x43   : > { %p643_p2 = pnand %p642_p1, %p636_p0 }
  0x45   : > { %646 = shalt.err (!%p643_p2)
}
  0x46   : > { %493 = dma.hbm_to_vmem [thread:$0]  (!%p865_p11), %s863_s19, 128, %s869_s24, %s122_s27  }
  0x47   : > { %p990_p7 = scmp.ne.s32.totalorder %s981_s17, 0 }
  0x48   : > { %s899_s22 = sand.u32 (!%p990_p7), 1, %s709_s10   ;;  %p991_p3 = scmp.ne.s32.totalorder (!%p990_p7), %s979_s15, 0 }
  0x49   : > { %141 = sbr.rel (%p990_p7) target bundleno = 364 (0x16c), region = 28  ;;  %s473_s25 = sshll.u32 (!%p990_p7), %s899_s22, 3 }
  0x4a   : > { %s144_s23 = scalar_lea.sflag (!%p990_p7), [#allocation3], %s899_s22  ;;  %s903_s28 = scalar_lea.vmem (!%p990_p7), [#allocation2], %s473_s25 }
  0x50   : > { %692 = dma.done.wait (%p991_p3), %s144_s23, 128  }
  0x51   : > { %694 = vsyncadd (%p991_p3), %s144_s23, 4294967168  ;;  %p992_p11 = scmp.eq.s32.totalorder %s779_s13, 0 }
  0x53   : > { %696 = dma.done.wait (%p992_p11), [#allocation6], 128   ;;  %p993_p4 = pmov %p992_p11 }
  0x54   : > { %v721_v0 = vmov 1   ;;  %v722_v1 = vmov 0   ;;  %v171_v2 = vld [vmem:[#allocation5] sm:$0x3f]  ;;  %v723_v3 = vmov 2   ;;  %v724_v4 = vmov 8  }
  0x55   : > { %698 = vsyncadd (%p993_p4), [#allocation6], 4294967168  ;;  %558 = vset.pattern.permute.xlu1 %v721_v0  ;;  %556 = vset.pattern.permute.xlu0 %v722_v1  ;;  %v725_v5 = vmov 3   ;;  %v726_v6 = vmov 4   ;;  %v727_v7 = vmov 5   ;;  %v728_v8 = vmov 7  }
  0x56   : > { %191 = vperm.xlu1 %558, %v171_v2   ;;  %181 = vperm.xlu0 %556, %v171_v2   ;;  %v729_v9 = vmov 6   ;;  %v172_v10 = vld [vmem:[#allocation5] sm:$0xf]  ;;  %v730_v11 = vmov 17   ;;  %v731_v12 = vmov 16   ;;  %v732_v13 = vmov 20  }
  0x57   : > { %v733_v14 = vmov 22   ;;  %v173_v15 = vld [vmem:[#allocation5] sm:$0x1]  ;;  %v734_v16 = vmov 28   ;;  %v735_v17 = vmov 18   ;;  %v736_v18 = vmov 27  }
  0x58   : > { %v737_v19 = vmov 19   ;;  %v738_v20 = vmov 21   ;;  %v739_v21 = vmov 24   ;;  %v740_v22 = vmov 25   ;;  %v174_v27 = vld [vmem:[%s903_s28] sm:$0xff]  ;;  %s475_s15 = sshll.u32 %s779_s13, 4 }
  0x59   : > { %v741_v23 = vmov 26   ;;  %v184_v24 = vlaneseq  ;;  %s170_s17 = scalar_lea.vmem [#allocation7], %s899_s22  ;;  %s929_s27 = scalar_lea.hbm %s975_s2, %s475_s15 }
  0x5a   : > { %559 = vset.pattern.permute.xlu1 %v723_v3  ;;  %557 = vset.pattern.permute.xlu0 %v724_v4  ;;  %s390_s19 = sshll.u32 %s170_s17, 4  ;;  %s378_s29 = scalar_lea.sflag [#allocation4], %s899_s22  ;;  %s931_s19 = int_to_ptr.vmem [resolvable:$true] %s390_s19 }
  0x5b   : > { %201 = vperm.xlu1 %559, %v171_v2   ;;  %177 = vperm.xlu0 %557, %v171_v2   ;;  %v913_v25 = vshrl.u32 %v184_v24, 7  ;;  %s647_s30 = scalar_lea.vmem %s931_s19, 16  ;;  %s742_s13 = smov [#allocation7]  }
  0x5c   : > { %p648_p6 = scmp.ne.s32.totalorder %s931_s19, %s647_s30  ;;  %s651_s3 = sshll.u32 %s742_s13, 4  ;;  %s652_s3 = int_to_ptr.vmem [resolvable:$false] %s651_s3 }
  0x5d   : > { %v186_v26 = vsub.s32 0, %v913_v25  ;;  %v196_v28 = vsub.s32 1, %v913_v25  ;;  %v206_v32 = vsub.s32 2, %v913_v25  ;;  %v216_v35 = vsub.s32 3, %v913_v25  ;;  %s653_s4 = scalar_lea.vmem %s652_s3, 32  ;;  %p654_p13 = scmp.lt.s32.totalorder %s931_s19, %s652_s3 }
  0x5e   : > { %v226_v39 = vsub.s32 4, %v913_v25  ;;  %v236_v45 = vsub.s32 5, %v913_v25  ;;  %v246_v54 = vsub.s32 6, %v913_v25  ;;  %v256_v55 = vsub.s32 7, %v913_v25  ;;  %p649_p9 = pnand %p648_p6, %p850_p8  ;;  %p655_p0 = scmp.lt.s32.totalorder %s653_s4, %s647_s30 }
  0x5f   : > { %560 = vset.pattern.permute.xlu1 %v725_v5  ;;  %561 = vset.pattern.permute.xlu0 %v726_v6  ;;  %v187_v29 = vrot.slane %v174_v27, %v186_v26  ;;  %v197_v33 = vrot.slane %v174_v27, %v196_v28  ;;  %v207_v36 = vrot.slane %v174_v27, %v206_v32 }
  0x60   : > { %211 = vperm.xlu1 %560, %v171_v2   ;;  %221 = vperm.xlu0 %561, %v171_v2   ;;  %v217_v42 = vrot.slane %v174_v27, %v216_v35  ;;  %v227_v46 = vrot.slane %v174_v27, %v226_v39  ;;  %v237_v51 = vrot.slane %v174_v27, %v236_v45  ;;  %p650_p12 = pneg %p649_p9  ;;  %p656_p5 = por %p655_p0, %p654_p13 }
  0x61   : > { %v247_v59 = vrot.slane %v174_v27, %v246_v54  ;;  %v257_v60 = vrot.slane %v174_v27, %v256_v55 }
  0x62   : > { %p657_p10 = pnand %p656_p5, %p650_p12 }
  0x64   : > { %562 = vset.pattern.permute.xlu1 %v727_v7  ;;  %564 = vset.pattern.permute.xlu0 %v728_v8 }
  0x65   : > { %231 = vperm.xlu1 %562, %v171_v2   ;;  %251 = vperm.xlu0 %564, %v171_v2  }
  0x69   : > { %563 = vset.pattern.permute.xlu1 %v729_v9  ;;  %567 = vset.pattern.permute.xlu0 %v730_v11 }
  0x6a   : > { %241 = vperm.xlu1 %563, %v171_v2   ;;  %281 = vperm.xlu0 %567, %v172_v10  }
  0x6e   : > { %565 = vset.pattern.permute.xlu1 %v731_v12  ;;  %570 = vset.pattern.permute.xlu0 %v732_v13 }
  0x6f   : > { %271 = vperm.xlu1 %565, %v172_v10   ;;  %311 = vperm.xlu0 %570, %v172_v10  }
  0x73   : > { %566 = vset.pattern.permute.xlu1 %v733_v14  ;;  %573 = vset.pattern.permute.xlu0 %v734_v16 }
  0x74   : > { %267 = vperm.xlu1 %566, %v172_v10   ;;  %337 = vperm.xlu0 %573, %v173_v15  }
  0x78   : > { %568 = vset.pattern.permute.xlu1 %v735_v17  ;;  %576 = vset.pattern.permute.xlu0 %v736_v18 }
  0x79   : > { %291 = vperm.xlu1 %568, %v172_v10   ;;  %364 = vperm.xlu0 %576, %v173_v15  }
  0x7d   : > { %569 = vset.pattern.permute.xlu1 %v737_v19 }
  0x7e   : > { %301 = vperm.xlu1 %569, %v172_v10  }
  0x82   : > { %571 = vset.pattern.permute.xlu1 %v738_v20 }
  0x83   : > { %321 = vperm.xlu1 %571, %v172_v10  }
  0x87   : > { %572 = vset.pattern.permute.xlu1 %v739_v21 }
  0x88   : > { %341 = vperm.xlu1 %572, %v173_v15  }
  0x8c   : > { %574 = vset.pattern.permute.xlu1 %v740_v22 }
  0x8d   : > { %347 = vperm.xlu1 %574, %v173_v15  }
  0x91   : > { %575 = vset.pattern.permute.xlu1 %v741_v23 }
  0x92   : > { %356 = vperm.xlu1 %575, %v173_v15  }
  0xd5   : > { %v192_v30 = vpop.permute.xlu1 %191  ;;  %v182_v31 = vpop.permute.xlu0 %181 }
  0xd6   : > { %v188_v34 = vmul.f32 %v187_v29, %v182_v31  ;;  %v198_v40 = vmul.f32 %v197_v33, %v192_v30 }
  0xda   : > { %v202_v37 = vpop.permute.xlu1 %201  ;;  %v178_v38 = vpop.permute.xlu0 %177 }
  0xdb   : > { %v189_v41 = vadd.f32 %v188_v34, %v178_v38  ;;  %v208_v43 = vmul.f32 %v207_v36, %v202_v37 }
  0xdd   : > { %v199_v44 = vadd.f32 %v198_v40, %v189_v41 }
  0xdf   : > { %v212_v47 = vpop.permute.xlu1 %211  ;;  %v209_v48 = vadd.f32 %v208_v43, %v199_v44  ;;  %v222_v49 = vpop.permute.xlu0 %221 }
  0xe0   : > { %v218_v50 = vmul.f32 %v217_v42, %v212_v47  ;;  %v228_v53 = vmul.f32 %v227_v46, %v222_v49 }
  0xe2   : > { %v219_v52 = vadd.f32 %v218_v50, %v209_v48 }
  0xe4   : > { %v232_v56 = vpop.permute.xlu1 %231  ;;  %v229_v57 = vadd.f32 %v228_v53, %v219_v52  ;;  %v252_v61 = vpop.permute.xlu0 %251 }
  0xe5   : > { %v238_v58 = vmul.f32 %v237_v51, %v232_v56  ;;  %v258_v1 = vmul.f32 %v257_v60, %v252_v61 }
  0xe7   : > { %v239_v63 = vadd.f32 %v238_v58, %v229_v57 }
  0xe9   : > { %v242_v62 = vpop.permute.xlu1 %241  ;;  %v282_v14 = vpop.permute.xlu0 %281 }
  0xea   : > { %v248_v0 = vmul.f32 %v247_v59, %v242_v62 }
  0xec   : > { %v249_v2 = vadd.f32 %v248_v0, %v239_v63 }
  0xee   : > { %v259_v3 = vadd.f32 %v258_v1, %v249_v2  ;;  %v272_v6 = vpop.permute.xlu1 %271  ;;  %v312_v24 = vpop.permute.xlu0 %311 }
  0xf0   : > { %v260_v4 = vsub.f32 0.0, %v259_v3 }
  0xf2   : > { %v261_v5 = vmul.f32 1.442695, %v260_v4 }
  0xf3   : > { %v268_v9 = vpop.permute.xlu1 %267  ;;  %v338_v41 = vpop.permute.xlu0 %337 }
  0xf4   : > { %577 = vpow2.f32 %v261_v5 }
  0xf8   : > { %v292_v10 = vpop.permute.xlu1 %291  ;;  %v365_v49 = vpop.permute.xlu0 %364 }
  0xfd   : > { %v302_v17 = vpop.permute.xlu1 %301 }
  0xfe   : > { %v578_v7 = vpop.eup %577 }
  0xff   : > { %v263_v8 = vadd.f32 1.0, %v578_v7 }
 0x101   : > { %579 = vrcp.f32 %v263_v8 }
 0x102   : > { %v322_v30 = vpop.permute.xlu1 %321 }
 0x10b   : > { %v580_v11 = vpop.eup %579 }
 0x10c   : > { %v277_v12 = vrot.slane %v580_v11, %v186_v26  ;;  %v287_v13 = vrot.slane %v580_v11, %v196_v28  ;;  %v297_v16 = vrot.slane %v580_v11, %v206_v32  ;;  %v307_v19 = vrot.slane %v580_v11, %v216_v35  ;;  %v342_v35 = vpop.permute.xlu1 %341 }
 0x10d   : > { %v317_v23 = vrot.slane %v580_v11, %v226_v39  ;;  %v327_v29 = vrot.slane %v580_v11, %v236_v45 }
 0x10e   : > { %v278_v15 = vmul.f32 %v277_v12, %v272_v6  ;;  %v288_v20 = vmul.f32 %v287_v13, %v282_v14  ;;  %v298_v21 = vmul.f32 %v297_v16, %v292_v10  ;;  %v308_v25 = vmul.f32 %v307_v19, %v302_v17 }
 0x10f   : > { %v318_v33 = vmul.f32 %v317_v23, %v312_v24  ;;  %v328_v34 = vmul.f32 %v327_v29, %v322_v30 }
 0x110   : > { %v279_v18 = vadd.f32 %v278_v15, %v268_v9  ;;  %v348_v40 = vpop.permute.xlu1 %347 }
 0x112   : > { %v289_v22 = vadd.f32 %v288_v20, %v279_v18 }
 0x114   : > { %v299_v27 = vadd.f32 %v298_v21, %v289_v22  ;;  %v357_v45 = vpop.permute.xlu1 %356 }
 0x116   : > { %v309_v31 = vadd.f32 %v308_v25, %v299_v27 }
 0x118   : > { %v319_v26 = vadd.f32 %v318_v33, %v309_v31 }
 0x11a   : > { %v329_v28 = vadd.f32 %v328_v34, %v319_v26 }
 0x11c   : > { %v330_v36 = vsub.f32 0.0, %v329_v28 }
 0x11e   : > { %v331_v37 = vmul.f32 1.442695, %v330_v36 }
 0x120   : > { %581 = vpow2.f32 %v331_v37 }
 0x12a   : > { %v582_v32 = vpop.eup %581 }
 0x12b   : > { %v333_v38 = vadd.f32 1.0, %v582_v32 }
 0x12d   : > { %583 = vrcp.f32 %v333_v38 }
 0x137   : > { %v584_v39 = vpop.eup %583 }
 0x138   : > { %v344_v42 = vmul.f32 %v584_v39, %v342_v35  ;;  %v351_v43 = vrot.slane %v584_v39, 1  ;;  %v359_v44 = vrot.slane %v584_v39, 2  ;;  %v367_v48 = vrot.slane %v584_v39, 3 }
 0x13a   : > { %v353_v46 = vmul.f32 %v351_v43, %v348_v40  ;;  %v345_v47 = vadd.f32 %v344_v42, %v338_v41  ;;  %v361_v51 = vmul.f32 %v359_v44, %v357_v45  ;;  %v369_v53 = vmul.f32 %v367_v48, %v365_v49 }
 0x13c   : > { %v354_v50 = vadd.f32 %v353_v46, %v345_v47 }
 0x13e   : > { %v362_v52 = vadd.f32 %v361_v51, %v354_v50 }
 0x140   : > { %v370_v54 = vadd.f32 %v369_v53, %v362_v52 }
 0x142   : > { %v371_v55 = vsub.f32 0.0, %v370_v54 }
 0x144   : > { %v372_v56 = vmul.f32 1.442695, %v371_v55 }
 0x146   : > { %585 = vpow2.f32 %v372_v56 }
 0x150   : > { %v586_v57 = vpop.eup %585 }
 0x151   : > { %v374_v58 = vadd.f32 1.0, %v586_v57 }
 0x153   : > { %587 = vrcp.f32 %v374_v58 }
 0x15d   : > { %v588_v59 = vpop.eup %587 }
 0x15e   : > { %376 = vst [vmem:[%s170_s17] sm:$0x1] %v588_v59 }
 0x15f   : > { %660 = shalt.err (!%p657_p10)
}
 0x160   : > { %s661_s5 = scalar_lea.hbm %s929_s27, 16  ;;  %s665_s18 = scalar_lea.hbm %s975_s2, 32 }
 0x161   : > { %p662_p1 = scmp.ne.s32.totalorder %s929_s27, %s661_s5  ;;  %p666_p3 = scmp.lt.u32.totalorder %s929_s27, %s975_s2 }
 0x162   : > { %p667_p11 = scmp.lt.u32.totalorder %s665_s18, %s661_s5  ;;  %p669_p6 = scmp.lt.u32.totalorder %s661_s5, %s929_s27 }
 0x163   : > { %p663_p2 = pnand %p662_p1, %p850_p8 }
 0x164   : > { %p668_p4 = por %p667_p11, %p666_p3 }
 0x165   : > { %p664_p7 = pneg %p663_p2 }
 0x166   : > { %p670_p9 = por %p669_p6, %p668_p4 }
 0x168   : > { %p671_p12 = pnand %p670_p9, %p664_p7 }
 0x16a   : > { %674 = shalt.err (!%p671_p12)
}
 0x16b   : > { %484 = dma.vmem_to_hbm [thread:$0]  (%p850_p8), %s931_s19, 16, %s929_s27, %s378_s29  }
 0x16c PF: > { %s402_s25 = sand.u32 1, %s705_s9   ;;  %p994_p13 = scmp.ne.s32.totalorder %s980_s16, 0 }
 0x16d   : > { %p995_p0 = scmp.ge.s32.totalorder %s717_s12, 2  ;;  %s403_s23 = scalar_lea.sflag [#allocation4], %s402_s25 }
 0x16f   : > { %p495_p5 = pnand %p995_p0, %p994_p13 }
 0x171   : > { %700 = dma.done.wait (!%p495_p5), %s403_s23, 16  }
 0x172   : > { %702 = vsyncadd (!%p495_p5), %s403_s23, 4294967280  ;;  %p16_p10 = scmp.ge.s32.totalorder %s806_s20, 4   ;;  %s996_s9 = smov %s709_s10 }
 0x173   : > { %s997_s10 = smov %s713_s11  ;;  %s998_s11 = smov %s842_s7 }
 0x174   : > { %s999_s12 = smov %s806_s20  ;;  %18 = sbr.rel (!%p16_p10) target bundleno = 6 (0x6), region = 77 }
 0x17b   :  { %407 = vsyncpa [#allocation3], 1 }
 0x17c   :  { %409 = vsyncpa [#allocation3 + $0x1], 1 }
 0x17d   :  { %410 = vsyncpa [#allocation6], 1 }
 0x17e   :  { %411 = vsyncpa [#allocation4], 1 }
 0x17f   :  { %413 = vsyncpa [#allocation4 + $0x1], 1 }

</bundles_post_ra>
